<compile_context>
chip_gen: v5e
topology: v5e:2x2
jax: 0.10.0
libtpu: 0.0.40
codegen_flags: <defaults>
</compile_context>

<pallas_src>
import jax
import jax.numpy as jnp
from jax.experimental import pallas as pl
from jax.experimental.pallas import tpu as pltpu


def _add_kernel(a_ref, b_ref, o_ref):
    # Pure VPU elementwise add on the resident VMEM tile.
    o_ref[...] = a_ref[...] + b_ref[...]


_TILE_ROWS = 512  # Used only for the large-activation tiled path.


def pallas_add(x369, x359):
    assert x369.shape == x359.shape
    assert x369.dtype == x359.dtype
    orig_shape = x369.shape

    # Lane-dense flatten: last dim an exact multiple of 128 lanes if possible.
    total = 1
    for d in orig_shape:
        total *= d
    if total % 128 == 0:
        rows, cols = total // 128, 128
    else:
        # Fallback: flatten leading dims, keep the trailing dim (still
        # correct, just not lane-dense).
        cols = orig_shape[-1]
        rows = total // cols
    a2d = x369.reshape(rows, cols)
    b2d = x359.reshape(rows, cols)

    if rows <= 2 * _TILE_ROWS:
        # Tiny slab (the module's (1,384,14,14) case -> (588,128)): single
        # block, no grid, no pipelining machinery -> minimal fixed overhead.
        out2d = pl.pallas_call(
            _add_kernel,
            out_shape=jax.ShapeDtypeStruct((rows, cols), a2d.dtype),
            in_specs=[
                pl.BlockSpec(memory_space=pltpu.MemorySpace.VMEM),
                pl.BlockSpec(memory_space=pltpu.MemorySpec.VMEM)
                if False
                else pl.BlockSpec(memory_space=pltpu.MemorySpace.VMEM),
            ],
            out_specs=pl.BlockSpec(memory_space=pltpu.MemorySpace.VMEM),
        )(a2d, b2d)
    else:
        # Large-activation path: lane-dense 512-row tiles, parallel grid axis
        # (keeps VMEM use small on v7x and lets both TensorCores share work).
        grid = (pl.cdiv(rows, _TILE_ROWS),)
        out2d = pl.pallas_call(
            _add_kernel,
            out_shape=jax.ShapeDtypeStruct((rows, cols), a2d.dtype),
            grid=grid,
            in_specs=[
                pl.BlockSpec((_TILE_ROWS, cols), lambda i: (i, 0)),
                pl.BlockSpec((_TILE_ROWS, cols), lambda i: (i, 0)),
            ],
            out_specs=pl.BlockSpec((_TILE_ROWS, cols), lambda i: (i, 0)),
            compiler_params=pltpu.CompilerParams(
                dimension_semantics=("parallel",)
            ),
        )(a2d, b2d)

    return out2d.reshape(orig_shape)


if __name__ == "__main__":
    key = jax.random.PRNGKey(0)
    k1, k2 = jax.random.split(key)
    # Module operates on [1, 384, 14, 14]; already small, keep exact shapes.
    x369 = jax.random.normal(k1, (1, 384, 14, 14), dtype=jnp.float32)
    x359 = jax.random.normal(k2, (1, 384, 14, 14), dtype=jnp.float32)

    out = pallas_add(x369, x359)
    out = jax.block_until_ready(out)

    # Verify against plain JAX reference.
    ref = x369 + x359
    assert out.shape == (1, 384, 14, 14)
    assert jnp.allclose(out, ref, atol=1e-6, rtol=1e-6)

    print("KERNEL_OK")
</pallas_src>

<mosaic_0001>
module attributes {stable_mosaic.version = 11 : i64} {
  func.func @_add_kernel(%arg0: memref<588x128xf32, #tpu.memory_space<vmem>>, %arg1: memref<588x128xf32, #tpu.memory_space<vmem>>, %arg2: memref<588x128xf32, #tpu.memory_space<vmem>>) attributes {dimension_semantics = [], scalar_prefetch = 0 : i64, scratch_operands = 0 : i64, tpu.core_type = #tpu.core_type<tc>} {
    %c0 = arith.constant 0 : index
    %c0_0 = arith.constant 0 : index
    %0 = vector.load %arg0[%c0, %c0_0] : memref<588x128xf32, #tpu.memory_space<vmem>>, vector<588x128xf32>
    %c0_1 = arith.constant 0 : index
    %c0_2 = arith.constant 0 : index
    %1 = vector.load %arg1[%c0_1, %c0_2] : memref<588x128xf32, #tpu.memory_space<vmem>>, vector<588x128xf32>
    %2 = arith.addf %0, %1 : vector<588x128xf32>
    %c0_3 = arith.constant 0 : index
    %c0_4 = arith.constant 0 : index
    %3 = vector.load %arg2[%c0_3, %c0_4] : memref<588x128xf32, #tpu.memory_space<vmem>>, vector<588x128xf32>
    tpu.vector_store %arg2[%c0_3, %c0_4], %2 {strides = array<i32>} : memref<588x128xf32, #tpu.memory_space<vmem>>, vector<588x128xf32>,
    return
  }
}

</mosaic_0001>

<bundles_post_ra>
// kernel: tpu_custom_call.1
= control target key start
LH: loop header
LB: loop body
LE: loop exit
PB: predicated region body
PF: predicated region fallthrough
CT: control target
= control target key end

     0   :  { %7 = vsyncpa [#allocation3], 0  ;;  %s481_s0 = inlined_call_operand.hbm [shape: f32[588,128], index: 0, kind: input, shape index: {}]   ;;  %s482_s1 = inlined_call_operand.hbm [shape: f32[588,128], index: 1, kind: input, shape index: {}]   ;;  %s483_s2 = inlined_call_operand.hbm [shape: f32[588,128], index: 2, kind: output, shape index: {}]  }
   0x1   :  { %8 = vsyncpa [#allocation6], 0 }
   0x2   :  { %9 = vsyncpa [#allocation4], 0  ;;  %s14_s11 = sshll.u32 %s481_s0, 4  ;;  %s443_s12 = smov [#allocation2]   ;;  %s15_s11 = int_to_ptr.hbm [resolvable:$true] %s14_s11 }
   0x3   :  { %s16_s13 = sshll.u32 %s443_s12, 4  ;;  %s27_s16 = sshll.u32 %s482_s1, 4  ;;  %s17_s13 = int_to_ptr.vmem [resolvable:$true] %s16_s13  ;;  %s28_s16 = int_to_ptr.hbm [resolvable:$true] %s27_s16 }
   0x4   :  { %s444_s17 = smov 128   ;;  %s445_s18 = smov 8  }
   0x5   :  { %22 = dma.hbm_to_vmem [thread:$0]  %s15_s11, 9472, %s17_s13, [#allocation3], %s444_s17, %s444_s17, %s445_s18  }
   0x6   :  { %s446_s19 = smov [#allocation5]  }
   0x7   :  { %s29_s20 = sshll.u32 %s446_s19, 4  ;;  %s30_s20 = int_to_ptr.vmem [resolvable:$true] %s29_s20 }
   0x8   :  { %35 = dma.hbm_to_vmem [thread:$0]  %s28_s16, 9472, %s30_s20, [#allocation6], %s444_s17, %s444_s17, %s445_s18  }
   0x9   :  { %437 = dma.done.wait [#allocation3], 9472  }
   0xa   :  { %438 = vsyncadd [#allocation3], 4294957824 }
   0xb   :  { %439 = dma.done.wait [#allocation6], 9472  }
   0xc   :  { %440 = vsyncadd [#allocation6], 4294957824  ;;  %v44_v0 = vld [vmem:[#allocation2] sm:$0xff]  ;;  %v118_v1 = vld [vmem:[#allocation5] sm:$0xff]  ;;  %s447_s0 = smov [#allocation7]   ;;  %s346_s23 = sshll.u32 %s483_s2, 4  ;;  %s347_s23 = int_to_ptr.hbm [resolvable:$true] %s346_s23 }
   0xd   :  { %v45_v2 = vld [vmem:[#allocation2 + $0x8] sm:$0xff]  ;;  %v192_v3 = vadd.f32 %v118_v1, %v44_v0  ;;  %v119_v4 = vld [vmem:[#allocation5 + $0x8] sm:$0xff]  ;;  %v46_v5 = vld [vmem:[#allocation2 + $0x10] sm:$0xff]  ;;  %s344_s1 = sshll.u32 %s447_s0, 4  ;;  %s345_s1 = int_to_ptr.vmem [resolvable:$true] %s344_s1 }
   0xe   :  { %v120_v6 = vld [vmem:[#allocation5 + $0x10] sm:$0xff]  ;;  %v193_v7 = vadd.f32 %v119_v4, %v45_v2  ;;  %v47_v9 = vld [vmem:[#allocation2 + $0x18] sm:$0xff]  ;;  %v121_v10 = vld [vmem:[#allocation5 + $0x18] sm:$0xff] }
   0xf   :  { %v194_v8 = vadd.f32 %v120_v6, %v46_v5  ;;  %v48_v11 = vld [vmem:[#allocation2 + $0x20] sm:$0xff]  ;;  %266 = vst [vmem:[#allocation7] sm:$0xff] %v192_v3  ;;  %v195_v12 = vadd.f32 %v121_v10, %v47_v9  ;;  %v122_v13 = vld [vmem:[#allocation5 + $0x20] sm:$0xff]  ;;  %v49_v14 = vld [vmem:[#allocation2 + $0x28] sm:$0xff] }
  0x10   :  { %v123_v15 = vld [vmem:[#allocation5 + $0x28] sm:$0xff]  ;;  %267 = vst [vmem:[#allocation7 + $0x8] sm:$0xff] %v193_v7  ;;  %v196_v16 = vadd.f32 %v122_v13, %v48_v11  ;;  %v50_v18 = vld [vmem:[#allocation2 + $0x30] sm:$0xff]  ;;  %v124_v19 = vld [vmem:[#allocation5 + $0x30] sm:$0xff] }
  0x11   :  { %v197_v17 = vadd.f32 %v123_v15, %v49_v14  ;;  %v51_v20 = vld [vmem:[#allocation2 + $0x38] sm:$0xff]  ;;  %268 = vst [vmem:[#allocation7 + $0x10] sm:$0xff] %v194_v8  ;;  %v198_v21 = vadd.f32 %v124_v19, %v50_v18  ;;  %v125_v22 = vld [vmem:[#allocation5 + $0x38] sm:$0xff]  ;;  %v52_v23 = vld [vmem:[#allocation2 + $0x40] sm:$0xff] }
  0x12   :  { %v126_v24 = vld [vmem:[#allocation5 + $0x40] sm:$0xff]  ;;  %269 = vst [vmem:[#allocation7 + $0x18] sm:$0xff] %v195_v12  ;;  %v199_v25 = vadd.f32 %v125_v22, %v51_v20  ;;  %v53_v26 = vld [vmem:[#allocation2 + $0x48] sm:$0xff]  ;;  %v127_v27 = vld [vmem:[#allocation5 + $0x48] sm:$0xff] }
  0x13   :  { %v54_v28 = vld [vmem:[#allocation2 + $0x50] sm:$0xff]  ;;  %270 = vst [vmem:[#allocation7 + $0x20] sm:$0xff] %v196_v16  ;;  %v200_v29 = vadd.f32 %v126_v24, %v52_v23  ;;  %v128_v30 = vld [vmem:[#allocation5 + $0x50] sm:$0xff]  ;;  %v55_v31 = vld [vmem:[#allocation2 + $0x58] sm:$0xff]  ;;  %v201_v33 = vadd.f32 %v127_v27, %v53_v26 }
  0x14   :  { %v129_v32 = vld [vmem:[#allocation5 + $0x58] sm:$0xff]  ;;  %271 = vst [vmem:[#allocation7 + $0x28] sm:$0xff] %v197_v17  ;;  %v56_v34 = vld [vmem:[#allocation2 + $0x60] sm:$0xff]  ;;  %v130_v35 = vld [vmem:[#allocation5 + $0x60] sm:$0xff]  ;;  %v202_v36 = vadd.f32 %v128_v30, %v54_v28 }
  0x15   :  { %272 = vst [vmem:[#allocation7 + $0x30] sm:$0xff] %v198_v21  ;;  %v57_v37 = vld [vmem:[#allocation2 + $0x68] sm:$0xff]  ;;  %v131_v38 = vld [vmem:[#allocation5 + $0x68] sm:$0xff]  ;;  %v203_v39 = vadd.f32 %v129_v32, %v55_v31  ;;  %v58_v40 = vld [vmem:[#allocation2 + $0x70] sm:$0xff]  ;;  %v204_v42 = vadd.f32 %v130_v35, %v56_v34 }
  0x16   :  { %273 = vst [vmem:[#allocation7 + $0x38] sm:$0xff] %v199_v25  ;;  %v132_v41 = vld [vmem:[#allocation5 + $0x70] sm:$0xff]  ;;  %v59_v43 = vld [vmem:[#allocation2 + $0x78] sm:$0xff]  ;;  %v133_v44 = vld [vmem:[#allocation5 + $0x78] sm:$0xff]  ;;  %v205_v45 = vadd.f32 %v131_v38, %v57_v37 }
  0x17   :  { %274 = vst [vmem:[#allocation7 + $0x40] sm:$0xff] %v200_v29  ;;  %v60_v46 = vld [vmem:[#allocation2 + $0x80] sm:$0xff]  ;;  %v134_v47 = vld [vmem:[#allocation5 + $0x80] sm:$0xff]  ;;  %v206_v48 = vadd.f32 %v132_v41, %v58_v40  ;;  %v61_v49 = vld [vmem:[#allocation2 + $0x88] sm:$0xff]  ;;  %v207_v51 = vadd.f32 %v133_v44, %v59_v43 }
  0x18   :  { %275 = vst [vmem:[#allocation7 + $0x48] sm:$0xff] %v201_v33  ;;  %v135_v50 = vld [vmem:[#allocation5 + $0x88] sm:$0xff]  ;;  %v62_v52 = vld [vmem:[#allocation2 + $0x90] sm:$0xff]  ;;  %v136_v53 = vld [vmem:[#allocation5 + $0x90] sm:$0xff]  ;;  %v208_v54 = vadd.f32 %v134_v47, %v60_v46 }
  0x19   :  { %276 = vst [vmem:[#allocation7 + $0x50] sm:$0xff] %v202_v36  ;;  %v63_v55 = vld [vmem:[#allocation2 + $0x98] sm:$0xff]  ;;  %v137_v56 = vld [vmem:[#allocation5 + $0x98] sm:$0xff]  ;;  %v209_v57 = vadd.f32 %v135_v50, %v61_v49  ;;  %v64_v58 = vld [vmem:[#allocation2 + $0xa0] sm:$0xff]  ;;  %v210_v60 = vadd.f32 %v136_v53, %v62_v52 }
  0x1a   :  { %277 = vst [vmem:[#allocation7 + $0x58] sm:$0xff] %v203_v39  ;;  %v138_v59 = vld [vmem:[#allocation5 + $0xa0] sm:$0xff]  ;;  %v65_v61 = vld [vmem:[#allocation2 + $0xa8] sm:$0xff]  ;;  %v139_v62 = vld [vmem:[#allocation5 + $0xa8] sm:$0xff]  ;;  %v211_v63 = vadd.f32 %v137_v56, %v63_v55 }
  0x1b   :  { %278 = vst [vmem:[#allocation7 + $0x60] sm:$0xff] %v204_v42  ;;  %v66_v0 = vld [vmem:[#allocation2 + $0xb0] sm:$0xff]  ;;  %v140_v1 = vld [vmem:[#allocation5 + $0xb0] sm:$0xff]  ;;  %v212_v2 = vadd.f32 %v138_v59, %v64_v58  ;;  %v67_v3 = vld [vmem:[#allocation2 + $0xb8] sm:$0xff]  ;;  %v213_v5 = vadd.f32 %v139_v62, %v65_v61 }
  0x1c   :  { %279 = vst [vmem:[#allocation7 + $0x68] sm:$0xff] %v205_v45  ;;  %v141_v4 = vld [vmem:[#allocation5 + $0xb8] sm:$0xff]  ;;  %v68_v6 = vld [vmem:[#allocation2 + $0xc0] sm:$0xff]  ;;  %v142_v7 = vld [vmem:[#allocation5 + $0xc0] sm:$0xff]  ;;  %v214_v8 = vadd.f32 %v140_v1, %v66_v0 }
  0x1d   :  { %280 = vst [vmem:[#allocation7 + $0x70] sm:$0xff] %v206_v48  ;;  %v69_v9 = vld [vmem:[#allocation2 + $0xc8] sm:$0xff]  ;;  %v143_v10 = vld [vmem:[#allocation5 + $0xc8] sm:$0xff]  ;;  %v215_v11 = vadd.f32 %v141_v4, %v67_v3  ;;  %v70_v12 = vld [vmem:[#allocation2 + $0xd0] sm:$0xff]  ;;  %v216_v14 = vadd.f32 %v142_v7, %v68_v6 }
  0x1e   :  { %281 = vst [vmem:[#allocation7 + $0x78] sm:$0xff] %v207_v51  ;;  %v144_v13 = vld [vmem:[#allocation5 + $0xd0] sm:$0xff]  ;;  %v71_v15 = vld [vmem:[#allocation2 + $0xd8] sm:$0xff]  ;;  %v145_v16 = vld [vmem:[#allocation5 + $0xd8] sm:$0xff]  ;;  %v217_v17 = vadd.f32 %v143_v10, %v69_v9 }
  0x1f   :  { %282 = vst [vmem:[#allocation7 + $0x80] sm:$0xff] %v208_v54  ;;  %v72_v18 = vld [vmem:[#allocation2 + $0xe0] sm:$0xff]  ;;  %v146_v19 = vld [vmem:[#allocation5 + $0xe0] sm:$0xff]  ;;  %v218_v20 = vadd.f32 %v144_v13, %v70_v12  ;;  %v73_v21 = vld [vmem:[#allocation2 + $0xe8] sm:$0xff]  ;;  %v219_v23 = vadd.f32 %v145_v16, %v71_v15 }
  0x20   :  { %283 = vst [vmem:[#allocation7 + $0x88] sm:$0xff] %v209_v57  ;;  %v147_v22 = vld [vmem:[#allocation5 + $0xe8] sm:$0xff]  ;;  %v74_v24 = vld [vmem:[#allocation2 + $0xf0] sm:$0xff]  ;;  %v148_v25 = vld [vmem:[#allocation5 + $0xf0] sm:$0xff]  ;;  %v220_v26 = vadd.f32 %v146_v19, %v72_v18 }
  0x21   :  { %284 = vst [vmem:[#allocation7 + $0x90] sm:$0xff] %v210_v60  ;;  %v75_v27 = vld [vmem:[#allocation2 + $0xf8] sm:$0xff]  ;;  %v149_v28 = vld [vmem:[#allocation5 + $0xf8] sm:$0xff]  ;;  %v221_v29 = vadd.f32 %v147_v22, %v73_v21  ;;  %v76_v30 = vld [vmem:[#allocation2 + $0x100] sm:$0xff]  ;;  %v222_v32 = vadd.f32 %v148_v25, %v74_v24 }
  0x22   :  { %285 = vst [vmem:[#allocation7 + $0x98] sm:$0xff] %v211_v63  ;;  %v150_v31 = vld [vmem:[#allocation5 + $0x100] sm:$0xff]  ;;  %v77_v33 = vld [vmem:[#allocation2 + $0x108] sm:$0xff]  ;;  %v151_v34 = vld [vmem:[#allocation5 + $0x108] sm:$0xff]  ;;  %v223_v35 = vadd.f32 %v149_v28, %v75_v27 }
  0x23   :  { %286 = vst [vmem:[#allocation7 + $0xa0] sm:$0xff] %v212_v2  ;;  %v78_v36 = vld [vmem:[#allocation2 + $0x110] sm:$0xff]  ;;  %v152_v37 = vld [vmem:[#allocation5 + $0x110] sm:$0xff]  ;;  %v224_v38 = vadd.f32 %v150_v31, %v76_v30  ;;  %v79_v39 = vld [vmem:[#allocation2 + $0x118] sm:$0xff]  ;;  %v225_v41 = vadd.f32 %v151_v34, %v77_v33 }
  0x24   :  { %287 = vst [vmem:[#allocation7 + $0xa8] sm:$0xff] %v213_v5  ;;  %v153_v40 = vld [vmem:[#allocation5 + $0x118] sm:$0xff]  ;;  %v80_v42 = vld [vmem:[#allocation2 + $0x120] sm:$0xff]  ;;  %v154_v43 = vld [vmem:[#allocation5 + $0x120] sm:$0xff]  ;;  %v226_v44 = vadd.f32 %v152_v37, %v78_v36 }
  0x25   :  { %288 = vst [vmem:[#allocation7 + $0xb0] sm:$0xff] %v214_v8  ;;  %v81_v45 = vld [vmem:[#allocation2 + $0x128] sm:$0xff]  ;;  %v155_v46 = vld [vmem:[#allocation5 + $0x128] sm:$0xff]  ;;  %v227_v47 = vadd.f32 %v153_v40, %v79_v39  ;;  %v82_v48 = vld [vmem:[#allocation2 + $0x130] sm:$0xff]  ;;  %v228_v50 = vadd.f32 %v154_v43, %v80_v42 }
  0x26   :  { %289 = vst [vmem:[#allocation7 + $0xb8] sm:$0xff] %v215_v11  ;;  %v156_v49 = vld [vmem:[#allocation5 + $0x130] sm:$0xff]  ;;  %v83_v51 = vld [vmem:[#allocation2 + $0x138] sm:$0xff]  ;;  %v157_v52 = vld [vmem:[#allocation5 + $0x138] sm:$0xff]  ;;  %v229_v53 = vadd.f32 %v155_v46, %v81_v45 }
  0x27   :  { %290 = vst [vmem:[#allocation7 + $0xc0] sm:$0xff] %v216_v14  ;;  %v84_v54 = vld [vmem:[#allocation2 + $0x140] sm:$0xff]  ;;  %v158_v55 = vld [vmem:[#allocation5 + $0x140] sm:$0xff]  ;;  %v230_v56 = vadd.f32 %v156_v49, %v82_v48  ;;  %v85_v57 = vld [vmem:[#allocation2 + $0x148] sm:$0xff]  ;;  %v231_v59 = vadd.f32 %v157_v52, %v83_v51 }
  0x28   :  { %291 = vst [vmem:[#allocation7 + $0xc8] sm:$0xff] %v217_v17  ;;  %v159_v58 = vld [vmem:[#allocation5 + $0x148] sm:$0xff]  ;;  %v86_v60 = vld [vmem:[#allocation2 + $0x150] sm:$0xff]  ;;  %v160_v61 = vld [vmem:[#allocation5 + $0x150] sm:$0xff]  ;;  %v232_v62 = vadd.f32 %v158_v55, %v84_v54 }
  0x29   :  { %292 = vst [vmem:[#allocation7 + $0xd0] sm:$0xff] %v218_v20  ;;  %v87_v63 = vld [vmem:[#allocation2 + $0x158] sm:$0xff]  ;;  %v161_v0 = vld [vmem:[#allocation5 + $0x158] sm:$0xff]  ;;  %v233_v1 = vadd.f32 %v159_v58, %v85_v57  ;;  %v88_v2 = vld [vmem:[#allocation2 + $0x160] sm:$0xff]  ;;  %v234_v4 = vadd.f32 %v160_v61, %v86_v60 }
  0x2a   :  { %293 = vst [vmem:[#allocation7 + $0xd8] sm:$0xff] %v219_v23  ;;  %v162_v3 = vld [vmem:[#allocation5 + $0x160] sm:$0xff]  ;;  %v89_v5 = vld [vmem:[#allocation2 + $0x168] sm:$0xff]  ;;  %v163_v6 = vld [vmem:[#allocation5 + $0x168] sm:$0xff]  ;;  %v235_v7 = vadd.f32 %v161_v0, %v87_v63 }
  0x2b   :  { %294 = vst [vmem:[#allocation7 + $0xe0] sm:$0xff] %v220_v26  ;;  %v90_v8 = vld [vmem:[#allocation2 + $0x170] sm:$0xff]  ;;  %v164_v9 = vld [vmem:[#allocation5 + $0x170] sm:$0xff]  ;;  %v236_v10 = vadd.f32 %v162_v3, %v88_v2  ;;  %v91_v11 = vld [vmem:[#allocation2 + $0x178] sm:$0xff]  ;;  %v237_v13 = vadd.f32 %v163_v6, %v89_v5 }
  0x2c   :  { %295 = vst [vmem:[#allocation7 + $0xe8] sm:$0xff] %v221_v29  ;;  %v165_v12 = vld [vmem:[#allocation5 + $0x178] sm:$0xff]  ;;  %v92_v14 = vld [vmem:[#allocation2 + $0x180] sm:$0xff]  ;;  %v166_v15 = vld [vmem:[#allocation5 + $0x180] sm:$0xff]  ;;  %v238_v16 = vadd.f32 %v164_v9, %v90_v8 }
  0x2d   :  { %296 = vst [vmem:[#allocation7 + $0xf0] sm:$0xff] %v222_v32  ;;  %v93_v17 = vld [vmem:[#allocation2 + $0x188] sm:$0xff]  ;;  %v167_v18 = vld [vmem:[#allocation5 + $0x188] sm:$0xff]  ;;  %v239_v19 = vadd.f32 %v165_v12, %v91_v11  ;;  %v94_v20 = vld [vmem:[#allocation2 + $0x190] sm:$0xff]  ;;  %v240_v22 = vadd.f32 %v166_v15, %v92_v14 }
  0x2e   :  { %297 = vst [vmem:[#allocation7 + $0xf8] sm:$0xff] %v223_v35  ;;  %v168_v21 = vld [vmem:[#allocation5 + $0x190] sm:$0xff]  ;;  %v95_v23 = vld [vmem:[#allocation2 + $0x198] sm:$0xff]  ;;  %v169_v24 = vld [vmem:[#allocation5 + $0x198] sm:$0xff]  ;;  %v241_v25 = vadd.f32 %v167_v18, %v93_v17 }
  0x2f   :  { %298 = vst [vmem:[#allocation7 + $0x100] sm:$0xff] %v224_v38  ;;  %v96_v26 = vld [vmem:[#allocation2 + $0x1a0] sm:$0xff]  ;;  %v170_v27 = vld [vmem:[#allocation5 + $0x1a0] sm:$0xff]  ;;  %v242_v28 = vadd.f32 %v168_v21, %v94_v20  ;;  %v97_v29 = vld [vmem:[#allocation2 + $0x1a8] sm:$0xff]  ;;  %v243_v31 = vadd.f32 %v169_v24, %v95_v23 }
  0x30   :  { %299 = vst [vmem:[#allocation7 + $0x108] sm:$0xff] %v225_v41  ;;  %v171_v30 = vld [vmem:[#allocation5 + $0x1a8] sm:$0xff]  ;;  %v98_v32 = vld [vmem:[#allocation2 + $0x1b0] sm:$0xff]  ;;  %v172_v33 = vld [vmem:[#allocation5 + $0x1b0] sm:$0xff]  ;;  %v244_v34 = vadd.f32 %v170_v27, %v96_v26 }
  0x31   :  { %300 = vst [vmem:[#allocation7 + $0x110] sm:$0xff] %v226_v44  ;;  %v99_v35 = vld [vmem:[#allocation2 + $0x1b8] sm:$0xff]  ;;  %v173_v36 = vld [vmem:[#allocation5 + $0x1b8] sm:$0xff]  ;;  %v245_v37 = vadd.f32 %v171_v30, %v97_v29  ;;  %v100_v38 = vld [vmem:[#allocation2 + $0x1c0] sm:$0xff]  ;;  %v246_v40 = vadd.f32 %v172_v33, %v98_v32 }
  0x32   :  { %301 = vst [vmem:[#allocation7 + $0x118] sm:$0xff] %v227_v47  ;;  %v174_v39 = vld [vmem:[#allocation5 + $0x1c0] sm:$0xff]  ;;  %v101_v41 = vld [vmem:[#allocation2 + $0x1c8] sm:$0xff]  ;;  %v175_v42 = vld [vmem:[#allocation5 + $0x1c8] sm:$0xff]  ;;  %v247_v43 = vadd.f32 %v173_v36, %v99_v35 }
  0x33   :  { %302 = vst [vmem:[#allocation7 + $0x120] sm:$0xff] %v228_v50  ;;  %v102_v44 = vld [vmem:[#allocation2 + $0x1d0] sm:$0xff]  ;;  %v176_v45 = vld [vmem:[#allocation5 + $0x1d0] sm:$0xff]  ;;  %v248_v46 = vadd.f32 %v174_v39, %v100_v38  ;;  %v103_v47 = vld [vmem:[#allocation2 + $0x1d8] sm:$0xff]  ;;  %v249_v49 = vadd.f32 %v175_v42, %v101_v41 }
  0x34   :  { %303 = vst [vmem:[#allocation7 + $0x128] sm:$0xff] %v229_v53  ;;  %v177_v48 = vld [vmem:[#allocation5 + $0x1d8] sm:$0xff]  ;;  %v104_v50 = vld [vmem:[#allocation2 + $0x1e0] sm:$0xff]  ;;  %v178_v51 = vld [vmem:[#allocation5 + $0x1e0] sm:$0xff]  ;;  %v250_v52 = vadd.f32 %v176_v45, %v102_v44 }
  0x35   :  { %304 = vst [vmem:[#allocation7 + $0x130] sm:$0xff] %v230_v56  ;;  %v105_v53 = vld [vmem:[#allocation2 + $0x1e8] sm:$0xff]  ;;  %v179_v54 = vld [vmem:[#allocation5 + $0x1e8] sm:$0xff]  ;;  %v251_v55 = vadd.f32 %v177_v48, %v103_v47  ;;  %v106_v56 = vld [vmem:[#allocation2 + $0x1f0] sm:$0xff]  ;;  %v252_v58 = vadd.f32 %v178_v51, %v104_v50 }
  0x36   :  { %305 = vst [vmem:[#allocation7 + $0x138] sm:$0xff] %v231_v59  ;;  %v180_v57 = vld [vmem:[#allocation5 + $0x1f0] sm:$0xff]  ;;  %v107_v59 = vld [vmem:[#allocation2 + $0x1f8] sm:$0xff]  ;;  %v181_v60 = vld [vmem:[#allocation5 + $0x1f8] sm:$0xff]  ;;  %v253_v61 = vadd.f32 %v179_v54, %v105_v53 }
  0x37   :  { %306 = vst [vmem:[#allocation7 + $0x140] sm:$0xff] %v232_v62  ;;  %v108_v62 = vld [vmem:[#allocation2 + $0x200] sm:$0xff]  ;;  %v182_v63 = vld [vmem:[#allocation5 + $0x200] sm:$0xff]  ;;  %v254_v0 = vadd.f32 %v180_v57, %v106_v56  ;;  %v183_v2 = vld [vmem:[#allocation5 + $0x208] sm:$0xff]  ;;  %v255_v3 = vadd.f32 %v181_v60, %v107_v59 }
  0x38   :  { %307 = vst [vmem:[#allocation7 + $0x148] sm:$0xff] %v233_v1  ;;  %v109_v1 = vld [vmem:[#allocation2 + $0x208] sm:$0xff]  ;;  %v184_v5 = vld [vmem:[#allocation5 + $0x210] sm:$0xff]  ;;  %v256_v6 = vadd.f32 %v182_v63, %v108_v62  ;;  %v186_v11 = vld [vmem:[#allocation5 + $0x220] sm:$0xff] }
  0x39   :  { %308 = vst [vmem:[#allocation7 + $0x150] sm:$0xff] %v234_v4  ;;  %v110_v4 = vld [vmem:[#allocation2 + $0x210] sm:$0xff]  ;;  %v185_v8 = vld [vmem:[#allocation5 + $0x218] sm:$0xff]  ;;  %v257_v9 = vadd.f32 %v183_v2, %v109_v1  ;;  %v187_v14 = vld [vmem:[#allocation5 + $0x228] sm:$0xff] }
  0x3a   :  { %309 = vst [vmem:[#allocation7 + $0x158] sm:$0xff] %v235_v7  ;;  %v111_v7 = vld [vmem:[#allocation2 + $0x218] sm:$0xff]  ;;  %v258_v12 = vadd.f32 %v184_v5, %v110_v4  ;;  %v188_v17 = vld [vmem:[#allocation5 + $0x230] sm:$0xff]  ;;  %v189_v20 = vld [vmem:[#allocation5 + $0x238] sm:$0xff] }
  0x3b   :  { %310 = vst [vmem:[#allocation7 + $0x160] sm:$0xff] %v236_v10  ;;  %v112_v10 = vld [vmem:[#allocation2 + $0x220] sm:$0xff]  ;;  %v259_v15 = vadd.f32 %v185_v8, %v111_v7  ;;  %v190_v23 = vld [vmem:[#allocation5 + $0x240] sm:$0xff]  ;;  %v191_v26 = vld [vmem:[#allocation5 + $0x248] sm:$0xf] }
  0x3c   :  { %311 = vst [vmem:[#allocation7 + $0x168] sm:$0xff] %v237_v13  ;;  %v113_v13 = vld [vmem:[#allocation2 + $0x228] sm:$0xff]  ;;  %v260_v18 = vadd.f32 %v186_v11, %v112_v10 }
  0x3d   :  { %312 = vst [vmem:[#allocation7 + $0x170] sm:$0xff] %v238_v16  ;;  %v114_v16 = vld [vmem:[#allocation2 + $0x230] sm:$0xff]  ;;  %v261_v21 = vadd.f32 %v187_v14, %v113_v13 }
  0x3e   :  { %313 = vst [vmem:[#allocation7 + $0x178] sm:$0xff] %v239_v19  ;;  %v115_v19 = vld [vmem:[#allocation2 + $0x238] sm:$0xff]  ;;  %v262_v24 = vadd.f32 %v188_v17, %v114_v16 }
  0x3f   :  { %314 = vst [vmem:[#allocation7 + $0x180] sm:$0xff] %v240_v22  ;;  %v116_v22 = vld [vmem:[#allocation2 + $0x240] sm:$0xff]  ;;  %v263_v27 = vadd.f32 %v189_v20, %v115_v19 }
  0x40   :  { %315 = vst [vmem:[#allocation7 + $0x188] sm:$0xff] %v241_v25  ;;  %v117_v25 = vld [vmem:[#allocation2 + $0x248] sm:$0xf] }
  0x41   :  { %316 = vst [vmem:[#allocation7 + $0x190] sm:$0xff] %v242_v28  ;;  %v264_v28 = vadd.f32 %v190_v23, %v116_v22  ;;  %v265_v29 = vadd.f32 %v191_v26, %v117_v25 }
  0x42   :  { %317 = vst [vmem:[#allocation7 + $0x198] sm:$0xff] %v243_v31 }
  0x43   :  { %318 = vst [vmem:[#allocation7 + $0x1a0] sm:$0xff] %v244_v34 }
  0x44   :  { %319 = vst [vmem:[#allocation7 + $0x1a8] sm:$0xff] %v245_v37 }
  0x45   :  { %320 = vst [vmem:[#allocation7 + $0x1b0] sm:$0xff] %v246_v40 }
  0x46   :  { %321 = vst [vmem:[#allocation7 + $0x1b8] sm:$0xff] %v247_v43 }
  0x47   :  { %322 = vst [vmem:[#allocation7 + $0x1c0] sm:$0xff] %v248_v46 }
  0x48   :  { %323 = vst [vmem:[#allocation7 + $0x1c8] sm:$0xff] %v249_v49 }
  0x49   :  { %324 = vst [vmem:[#allocation7 + $0x1d0] sm:$0xff] %v250_v52 }
  0x4a   :  { %325 = vst [vmem:[#allocation7 + $0x1d8] sm:$0xff] %v251_v55 }
  0x4b   :  { %326 = vst [vmem:[#allocation7 + $0x1e0] sm:$0xff] %v252_v58 }
  0x4c   :  { %327 = vst [vmem:[#allocation7 + $0x1e8] sm:$0xff] %v253_v61 }
  0x4d   :  { %328 = vst [vmem:[#allocation7 + $0x1f0] sm:$0xff] %v254_v0 }
  0x4e   :  { %329 = vst [vmem:[#allocation7 + $0x1f8] sm:$0xff] %v255_v3 }
  0x4f   :  { %330 = vst [vmem:[#allocation7 + $0x200] sm:$0xff] %v256_v6 }
  0x50   :  { %331 = vst [vmem:[#allocation7 + $0x208] sm:$0xff] %v257_v9 }
  0x51   :  { %332 = vst [vmem:[#allocation7 + $0x210] sm:$0xff] %v258_v12 }
  0x52   :  { %333 = vst [vmem:[#allocation7 + $0x218] sm:$0xff] %v259_v15 }
  0x53   :  { %334 = vst [vmem:[#allocation7 + $0x220] sm:$0xff] %v260_v18 }
  0x54   :  { %335 = vst [vmem:[#allocation7 + $0x228] sm:$0xff] %v261_v21 }
  0x55   :  { %336 = vst [vmem:[#allocation7 + $0x230] sm:$0xff] %v262_v24 }
  0x56   :  { %337 = vst [vmem:[#allocation7 + $0x238] sm:$0xff] %v263_v27 }
  0x57   :  { %338 = vst [vmem:[#allocation7 + $0x240] sm:$0xff] %v264_v28 }
  0x58   :  { %339 = vst [vmem:[#allocation7 + $0x248] sm:$0xf] %v265_v29 }
  0x59   :  { %352 = dma.vmem_to_hbm [thread:$0]  %s345_s1, 9472, %s347_s23, [#allocation4], %s444_s17, %s444_s17, %s445_s18  }
  0x5a   :  { %441 = dma.done.wait [#allocation4], 9472  }
  0x5b   :  { %442 = vsyncadd [#allocation4], 4294957824 }
  0x5c   :  { %357 = vsyncpa [#allocation3], 1 }
  0x5d   :  { %358 = vsyncpa [#allocation6], 1 }
  0x5e   :  { %359 = vsyncpa [#allocation4], 1 }

</bundles_post_ra>
